<compile_context>
chip_gen: v7x
topology: tpu7x:2x2x1
jax: 0.10.0
libtpu: 0.0.40
codegen_flags: <defaults>
</compile_context>

<pallas_src>
import jax
import jax.numpy as jnp
from jax.experimental import pallas as pl
from jax.experimental.pallas import tpu as pltpu


def _mlp_kernel(x_ref, w1_ref, b1_ref, w2t_ref, b2_ref, o_ref):
    # One batch tile per grid step; weights/biases are the same block every step.
    x = x_ref[...]                                            # (TB, D_in)
    h = jnp.dot(x, w1_ref[...],
                preferred_element_type=jnp.float32)           # (TB, H) on MXU
    h = jnp.maximum(h + b1_ref[...], 0.0)                     # bias + ReLU on VPU

    if w2t_ref.shape[0] == 1:
        # D_out == 1: VPU multiply + cross-lane reduce (XLU) avoids a second
        # MXU push/drain for a 12x1 contraction.
        y = jnp.sum(h * w2t_ref[...], axis=-1, keepdims=True)  # (TB, 1)
    else:
        # General case: h @ w2t.T via dot_general (contract on H).
        y = jax.lax.dot_general(h, w2t_ref[...],
                                (((1,), (1,)), ((), ())),
                                preferred_element_type=jnp.float32)

    o_ref[...] = (y + b2_ref[...]).astype(o_ref.dtype)


def _round_up(n, m):
    return ((n + m - 1) // m) * m


def diabetes_server_forward(x, w1, b1, w2t, b2, *, block_b=512):
    """x: (B, D_in) f32. w1: (D_in, H). b1: (1, H). w2t: (D_out, H). b2: (1, D_out).

    Returns (B, D_out) f32 = relu(x @ w1 + b1) @ w2t.T + b2.
    """
    B, D_in = x.shape
    H = w1.shape[1]
    D_out = w2t.shape[0]

    # Batch tile: multiple of 8 (sublane), capped at block_b rows.
    TB = min(block_b, _round_up(B, 8))
    grid_b = pl.cdiv(B, TB)
    B_pad = grid_b * TB
    if B_pad != B:
        x = jnp.pad(x, ((0, B_pad - B), (0, 0)))

    out = pl.pallas_call(
        _mlp_kernel,
        out_shape=jax.ShapeDtypeStruct((B_pad, D_out), jnp.float32),
        grid=(grid_b,),
        in_specs=[
            pl.BlockSpec((TB, D_in), lambda i: (i, 0)),   # batch-tiled activations
            pl.BlockSpec((D_in, H), lambda i: (0, 0)),    # resident fc1 weight
            pl.BlockSpec((1, H), lambda i: (0, 0)),       # resident fc1 bias
            pl.BlockSpec((D_out, H), lambda i: (0, 0)),   # resident fc2 weight (out, in)
            pl.BlockSpec((1, D_out), lambda i: (0, 0)),   # resident fc2 bias
        ],
        out_specs=pl.BlockSpec((TB, D_out), lambda i: (i, 0)),
        compiler_params=pltpu.CompilerParams(
            dimension_semantics=("parallel",)),           # megacore split on v7x
    )(x, w1, b1, w2t, b2)

    return out[:B] if B_pad != B else out


def init_params(key, input_dim, hidden_dim=12, output_dim=1):
    """Deterministic init mirroring torch.nn.Linear default U(-1/sqrt(fan_in), +)."""
    k1, k2, k3, k4 = jax.random.split(key, 4)
    bound1 = 1.0 / jnp.sqrt(jnp.float32(input_dim))
    bound2 = 1.0 / jnp.sqrt(jnp.float32(hidden_dim))
    # fc1 stored transposed (in, out) so the kernel does x @ W1 directly.
    w1 = jax.random.uniform(k1, (input_dim, hidden_dim), jnp.float32, -bound1, bound1)
    b1 = jax.random.uniform(k2, (1, hidden_dim), jnp.float32, -bound1, bound1)
    # fc2 kept in torch-native (out, in) layout: a (1, H) row for the VPU reduce.
    w2t = jax.random.uniform(k3, (output_dim, hidden_dim), jnp.float32, -bound2, bound2)
    b2 = jax.random.uniform(k4, (1, output_dim), jnp.float32, -bound2, bound2)
    return w1, b1, w2t, b2


def _reference(x, w1, b1, w2t, b2):
    return jnp.maximum(x @ w1 + b1, 0.0) @ w2t.T + b2


if __name__ == "__main__":
    key = jax.random.PRNGKey(0)
    kx, kp, kx2 = jax.random.split(key, 3)

    batch = 8
    input_dim = 16   # concatenated client embeddings fed to the VFL server
    hidden_dim = 12
    output_dim = 1

    w1, b1, w2t, b2 = init_params(kp, input_dim, hidden_dim, output_dim)

    # Small-batch path (single tile).
    x = jax.random.normal(kx, (batch, input_dim), jnp.float32)
    out = jax.block_until_ready(diabetes_server_forward(x, w1, b1, w2t, b2))
    ref = _reference(x, w1, b1, w2t, b2)
    assert out.shape == (batch, output_dim)
    assert jnp.allclose(out, ref, atol=1e-5, rtol=1e-5)

    # Multi-tile grid path (exercises batch tiling + padding).
    batch_big = 1031
    x2 = jax.random.normal(kx2, (batch_big, input_dim), jnp.float32)
    out2 = jax.block_until_ready(diabetes_server_forward(x2, w1, b1, w2t, b2))
    ref2 = _reference(x2, w1, b1, w2t, b2)
    assert out2.shape == (batch_big, output_dim)
    assert jnp.allclose(out2, ref2, atol=1e-4, rtol=1e-4)

    print("KERNEL_OK")
</pallas_src>

<mosaic_0001>
module attributes {stable_mosaic.version = 11 : i64} {
  func.func @_mlp_kernel(%arg0: i32, %arg1: memref<8x16xf32, #tpu.memory_space<vmem>>, %arg2: memref<16x12xf32, #tpu.memory_space<vmem>>, %arg3: memref<1x12xf32, #tpu.memory_space<vmem>>, %arg4: memref<1x12xf32, #tpu.memory_space<vmem>>, %arg5: memref<1x1xf32, #tpu.memory_space<vmem>>, %arg6: memref<8x1xf32, #tpu.memory_space<vmem>>) attributes {dimension_semantics = [#tpu.dimension_semantics<parallel>], iteration_bounds = array<i64: 1>, scalar_prefetch = 0 : i64, scratch_operands = 0 : i64, tpu.core_type = #tpu.core_type<tc>, window_params = [{transform_indices = @transform_0, window_bounds = array<i64: 8, 16>}, {pipeline_mode = #tpu.pipeline_mode<synchronous>, transform_indices = @transform_1, window_bounds = array<i64: 16, 12>}, {pipeline_mode = #tpu.pipeline_mode<synchronous>, transform_indices = @transform_2, window_bounds = array<i64: 1, 12>}, {pipeline_mode = #tpu.pipeline_mode<synchronous>, transform_indices = @transform_3, window_bounds = array<i64: 1, 12>}, {pipeline_mode = #tpu.pipeline_mode<synchronous>, transform_indices = @transform_4, window_bounds = array<i64: 1, 1>}, {transform_indices = @transform_5, window_bounds = array<i64: 8, 1>}]} {
    %c0 = arith.constant 0 : index
    %c0_0 = arith.constant 0 : index
    %0 = vector.load %arg1[%c0, %c0_0] : memref<8x16xf32, #tpu.memory_space<vmem>>, vector<8x16xf32>
    %c0_1 = arith.constant 0 : index
    %c0_2 = arith.constant 0 : index
    %1 = vector.load %arg2[%c0_1, %c0_2] : memref<16x12xf32, #tpu.memory_space<vmem>>, vector<16x12xf32>
    %cst = arith.constant dense<0.000000e+00> : vector<8x12xf32>
    %2 = tpu.matmul %0, %1, %cst {dimension_numbers = #tpu.dot_dimension_numbers<[1], [0], [0], [1], [0, 0, 1, 1], [], []>} : vector<8x16xf32>, vector<16x12xf32>, vector<8x12xf32> -> vector<8x12xf32>
    %c0_3 = arith.constant 0 : index
    %c0_4 = arith.constant 0 : index
    %3 = vector.load %arg3[%c0_3, %c0_4] : memref<1x12xf32, #tpu.memory_space<vmem>>, vector<1x12xf32>
    %4 = vector.broadcast %3 : vector<1x12xf32> to vector<8x12xf32>
    %5 = arith.addf %2, %4 : vector<8x12xf32>
    %cst_5 = arith.constant 0.000000e+00 : f32
    %6 = vector.broadcast %cst_5 : f32 to vector<8x12xf32>
    %7 = arith.maximumf %5, %6 : vector<8x12xf32>
    %c0_6 = arith.constant 0 : index
    %c0_7 = arith.constant 0 : index
    %8 = vector.load %arg4[%c0_6, %c0_7] : memref<1x12xf32, #tpu.memory_space<vmem>>, vector<1x12xf32>
    %9 = vector.broadcast %8 : vector<1x12xf32> to vector<8x12xf32>
    %10 = arith.mulf %7, %9 : vector<8x12xf32>
    %cst_8 = arith.constant dense<0.000000e+00> : vector<8xf32>
    %11 = vector.multi_reduction <add>, %10, %cst_8 [1] : vector<8x12xf32> to vector<8xf32>
    %12 = vector.shape_cast %11 : vector<8xf32> to vector<8x1xf32>
    %c0_9 = arith.constant 0 : index
    %c0_10 = arith.constant 0 : index
    %13 = vector.load %arg5[%c0_9, %c0_10] : memref<1x1xf32, #tpu.memory_space<vmem>>, vector<1x1xf32>
    %14 = vector.broadcast %13 : vector<1x1xf32> to vector<8x1xf32>
    %15 = arith.addf %12, %14 : vector<8x1xf32>
    %c0_11 = arith.constant 0 : index
    %c0_12 = arith.constant 0 : index
    %16 = vector.load %arg6[%c0_11, %c0_12] : memref<8x1xf32, #tpu.memory_space<vmem>>, vector<8x1xf32>
    tpu.vector_store %arg6[%c0_11, %c0_12], %15 {strides = array<i32>} : memref<8x1xf32, #tpu.memory_space<vmem>>, vector<8x1xf32>,
    return
  }
  func.func @transform_0(%arg0: i32) -> (i32, i32) {
    %c0_i32 = arith.constant 0 : i32
    %c0_i32_0 = arith.constant 0 : i32
    return %arg0, %c0_i32 : i32, i32
  }
  func.func @transform_1(%arg0: i32) -> (i32, i32) {
    %c0_i32 = arith.constant 0 : i32
    %c0_i32_0 = arith.constant 0 : i32
    %c0_i32_1 = arith.constant 0 : i32
    return %c0_i32, %c0_i32_0 : i32, i32
  }
  func.func @transform_2(%arg0: i32) -> (i32, i32) {
    %c0_i32 = arith.constant 0 : i32
    %c0_i32_0 = arith.constant 0 : i32
    %c0_i32_1 = arith.constant 0 : i32
    return %c0_i32, %c0_i32_0 : i32, i32
  }
  func.func @transform_3(%arg0: i32) -> (i32, i32) {
    %c0_i32 = arith.constant 0 : i32
    %c0_i32_0 = arith.constant 0 : i32
    %c0_i32_1 = arith.constant 0 : i32
    return %c0_i32, %c0_i32_0 : i32, i32
  }
  func.func @transform_4(%arg0: i32) -> (i32, i32) {
    %c0_i32 = arith.constant 0 : i32
    %c0_i32_0 = arith.constant 0 : i32
    %c0_i32_1 = arith.constant 0 : i32
    return %c0_i32, %c0_i32_0 : i32, i32
  }
  func.func @transform_5(%arg0: i32) -> (i32, i32) {
    %c0_i32 = arith.constant 0 : i32
    %c0_i32_0 = arith.constant 0 : i32
    return %arg0, %c0_i32 : i32, i32
  }
}

</mosaic_0001>

<bundles_post_ra>
// kernel: tpu_custom_call.1
= control target key start
LH: loop header
LB: loop body
LE: loop exit
PB: predicated region body
PF: predicated region fallthrough
CT: control target
= control target key end

     0   :  { %s313_s0 = inlined_call_operand.hbm [shape: f32[8,16], index: 0, kind: input, shape index: {}]   ;;  %s314_s1 = inlined_call_operand.hbm [shape: f32[16,12], index: 1, kind: input, shape index: {}]   ;;  %s315_s2 = inlined_call_operand.vmem [shape: f32[1,12], index: 2, kind: input, shape index: {}]   ;;  %s316_s3 = inlined_call_operand.vmem [shape: f32[1,12], index: 3, kind: input, shape index: {}]   ;;  %s317_s4 = inlined_call_operand.<no memory space> [shape: f32[1,1], index: 4, kind: input, shape index: {}]   ;;  %s318_s5 = inlined_call_operand.vmem [shape: f32[8,1], index: 5, kind: output, shape index: {}]  }
   0x1   :  { %v10_v0 = vstv %s317_s4 }
   0x2   :  { %11 = vst [vmem:[#allocation2] sm:$0x1] %v10_v0 }
   0x3   :  { %12 = vsyncpa [#allocation4], 0 }
   0x4   :  { %13 = vsyncpa [#allocation6], 0  ;;  %s233_s20 = smov [#allocation3]   ;;  %s234_s22 = smov [#allocation5]  }
   0x5   :  { %s20_s21 = sshll.u32 %s233_s20, 4  ;;  %s29_s23 = sshll.u32 %s234_s22, 4  ;;  %s21_s21 = int_to_ptr.vmem [resolvable:$true] %s20_s21  ;;  %s273_s23 = int_to_ptr.vmem [resolvable:$true] %s29_s23 }
   0x6   :  { %s185_s26 = scalar_lea.hbm %s313_s0, 128 }
   0x7   :  { %p186_p0 = scmp.ne.s32.totalorder %s313_s0, %s185_s26  ;;  %p189_p1 = scmp.lt.u32.totalorder %s185_s26, %s313_s0 }
   0x9   :  { %p191_p2 = pnand %p189_p1, %p186_p0 }
   0xb   :  { %194 = shalt.err (!%p191_p2)
}
   0xc   :  { %s195_s30 = scalar_lea.vmem %s21_s21, 128  ;;  %p200_p4 = scmp.lt.s32.totalorder %s21_s21, %s21_s21 }
   0xd   :  { %p196_p3 = scmp.ne.s32.totalorder %s21_s21, %s195_s30  ;;  %p201_p5 = scmp.lt.s32.totalorder %s195_s30, %s195_s30 }
   0xf   :  { %p202_p6 = por %p201_p5, %p200_p4 }
  0x11   :  { %p203_p7 = pnand %p202_p6, %p196_p3 }
  0x13   :  { %206 = shalt.err (!%p203_p7)
}
  0x14   :  { %23 = dma.hbm_to_vmem [thread:$0]  %s313_s0, 128, %s21_s21, [#allocation4]  }
  0x15   :  { %s207_s10 = scalar_lea.hbm %s314_s1, 256 }
  0x16   :  { %p208_p8 = scmp.ne.s32.totalorder %s314_s1, %s207_s10  ;;  %p211_p9 = scmp.lt.u32.totalorder %s207_s10, %s314_s1 }
  0x18   :  { %p213_p10 = pnand %p211_p9, %p208_p8 }
  0x1a   :  { %216 = shalt.err (!%p213_p10)
}
  0x1b   :  { %s217_s15 = scalar_lea.vmem %s273_s23, 256  ;;  %p222_p12 = scmp.lt.s32.totalorder %s273_s23, %s273_s23 }
  0x1c   :  { %p218_p11 = scmp.ne.s32.totalorder %s273_s23, %s217_s15  ;;  %p223_p13 = scmp.lt.s32.totalorder %s217_s15, %s217_s15 }
  0x1e   :  { %p224_p0 = por %p223_p13, %p222_p12 }
  0x20   :  { %p225_p1 = pnand %p224_p0, %p218_p11 }
  0x22   :  { %228 = shalt.err (!%p225_p1)
}
  0x23   :  { %s235_s0 = smov 128   ;;  %s236_s16 = smov 8  }
  0x24   :  { %35 = dma.hbm_to_vmem [thread:$0]  %s314_s1, 256, %s273_s23, [#allocation6], %s235_s0, %s235_s0, %s236_s16  }
  0x25   :  { %229 = dma.done.wait [#allocation4], 128  }
  0x26   :  { %230 = vsyncadd [#allocation4], 4294967168 }
  0x27   :  { %231 = dma.done.wait [#allocation6], 256  }
  0x28   :  { %232 = vsyncadd [#allocation6], 4294967040  ;;  %v237_v1 = vmov 0.0|0.0   ;;  %vm238_vm0 = vmmov 0   ;;  %v239_v2 = vmov 0.0   ;;  %v49_v3 = vld [vmem:[#allocation5] sm:$0xff] }
  0x29   :  { %175 = vmatprep.subr.bf16.mxu0 %v237_v1  ;;  %172 = vmatprep.mubr.msk.f32.mxu0 %vm238_vm0, %v239_v2  ;;  %v50_v4 = vld [vmem:[#allocation5 + $0x8] sm:$0xff]  ;;  %v48_v6 = vld [vmem:[#allocation3] sm:$0xff]  ;;  %vm58_vm1 = vcmask 130048   ;;  %v161_v7 = vld [vmem:[%s315_s2] ss:$0 sm:$0xff]  ;;  %vm141_vm2 = vcmask 97280  }
  0x2a   :  { %v176_v5 = vpack.c.bf16 %v50_v4, %v49_v3  ;;  %v163_v11 = vld [vmem:[%s316_s3] ss:$0 sm:$0xff]  ;;  %vm153_vm3 = vcmask 7168  }
  0x2b   :  { %v164_v15 = vld [vmem:[#allocation2] ss:$0 sm:$0xff] }
  0x2c   :  { %177 = vmatpush3.bf16.msra.mxu0 %v176_v5 }
  0x2f   :  { %173 = vmatmul.mubr.msk.f32.vlgmr.msra.gmra.mrb[0].mxu0 %vm58_vm1, %v48_v6 }
 0x102   :  { %v128_v8 = vpop.f32.mrb[0].mxu0 }
 0x103   :  { %v129_v9 = vadd.f32 %v161_v7, %v128_v8  ;;  %v174_v10 = vpop.f32.mrb[1].mxu0 }
 0x105   :  { %v132_v12 = vmax.f32 %v129_v9, 0.0 }
 0x107   :  { %v140_v13 = vmul.f32 %v163_v11, %v132_v12 }
 0x109   :  { %v142_v14 = vsel %vm141_vm2, %v140_v13, 0.0 }
 0x10a   :  { %143 = vadd.xlane.f32.xlu0 %v142_v14 }
 0x197   :  { %v144_v16 = vpop.xlane.xlu0 %143 }
 0x198   :  { %v152_v17 = vadd.f32 %v164_v15, %v144_v16 }
 0x19a   :  { %154 = vst.msk [vmem:[%s318_s5] sm:$0xff] %vm153_vm3, %v152_v17 }
 0x19b   :  { %159 = vsyncpa [#allocation4], 1 }
 0x19c   :  { %160 = vsyncpa [#allocation6], 1 }

</bundles_post_ra>
